<compile_context>
chip_gen: v6e
topology: v6e:2x2x1
jax: 0.10.0
libtpu: 0.0.40
codegen_flags: <defaults>
</compile_context>

<pallas_src>
import functools

import jax
import jax.numpy as jnp
from jax.experimental import pallas as pl
from jax.experimental.pallas import tpu as pltpu

C0, C1, C2 = 3, 8, 8        # channels: input, after conv1, after conv2
C0P = 8                     # conv1 input channels zero-padded 3 -> 8 (128 lanes)
K1, K2 = 3, 7               # kernel sizes
P1, P2 = 1, 3               # "same" paddings, stride 1
GAP = 8                     # zero rows between samples (>= 2*max(P1,P2), mult of 8)


def _fused_conv_relu_kernel(x_ref, w1_ref, b1_ref, w2_ref, b2_ref, o_ref,
                            xpad_ref, *, N, H, W):
    f32 = jnp.float32
    S = H + GAP                      # per-sample row stride in padded space
    ROWS = (N - 1) * S + H           # matmul M dim (includes inter-sample gaps)

    # ---- in-kernel NCHW -> packed (row, c*W + w) layout with zero padding ----
    xpad_ref[...] = jnp.zeros(xpad_ref.shape, f32)
    for n in range(N):               # static unroll: N * C0 small masked stores
        r0 = n * S + GAP
        for c in range(C0):
            xpad_ref[r0:r0 + H, c * W:(c + 1) * W] = x_ref[n, c]

    # ---- conv1 (3x3, pad 1) + ReLU: one (ROWS, K1*128) @ (K1*128, 128) ------
    lhs1 = jnp.concatenate(
        [xpad_ref[GAP - P1 + kh: GAP - P1 + kh + ROWS, :] for kh in range(K1)],
        axis=1).astype(jnp.bfloat16)
    a1 = jnp.maximum(
        jnp.dot(lhs1, w1_ref[...], preferred_element_type=f32) + b1_ref[...],
        0.0)                                              # (ROWS, W*C1), f32

    # ---- conv2 (7x7, pad 3) + ReLU -------------------------------------------
    # Padded activation lives purely in registers (aligned row concatenation).
    zrows = jnp.zeros((GAP, C1 * W), f32)
    pieces = []
    for n in range(N):
        pieces.append(zrows)
        pieces.append(a1[n * S:n * S + H, :])
    pieces.append(zrows)
    apad = jnp.concatenate(pieces, axis=0)                # (N*S + GAP, 128)
    lhs2 = jnp.concatenate(
        [apad[GAP - P2 + kh: GAP - P2 + kh + ROWS, :] for kh in range(K2)],
        axis=1).astype(jnp.bfloat16)
    a2 = jnp.maximum(
        jnp.dot(lhs2, w2_ref[...], preferred_element_type=f32) + b2_ref[...],
        0.0)                                              # (ROWS, W*C2), f32

    # ---- lane-dense packed store: row n*H + h, lane c*W + w ------------------
    for n in range(N):
        o_ref[n * H:(n + 1) * H, :] = a2[n * S:n * S + H, :]


def _make_banded_weight(w_hwio, W, pad, ci_pad):
    """B[kh*ci_pad*W + ci*W + w_in, co*W + w_out] = w_hwio[kh, w_in-w_out+pad, ci, co].

    A (rows, ci*W + w_in) activation slab matmul'd with B gives the conv's
    contribution for row tap kh, with "same" width padding folded in.
    """
    KH, KW, Ci, Co = w_hwio.shape
    w_in = jnp.arange(W)[:, None]
    w_out = jnp.arange(W)[None, :]
    kw = w_in - w_out + pad                                 # (W_in, W_out)
    valid = (kw >= 0) & (kw < KW)
    g = w_hwio[:, jnp.clip(kw, 0, KW - 1)]                  # (KH, Win, Wout, Ci, Co)
    g = jnp.where(valid[None, :, :, None, None], g, 0.0)
    g = jnp.transpose(g, (0, 3, 1, 4, 2))                   # (KH, Ci, Win, Co, Wout)
    b = g.reshape(KH, Ci * W, Co * W)
    if ci_pad > Ci:                                         # zero rows for padded channels
        b = jnp.concatenate(
            [b, jnp.zeros((KH, (ci_pad - Ci) * W, Co * W), b.dtype)], axis=1)
    return b.reshape(KH * ci_pad * W, Co * W)


def prepare_params(params, W):
    """One-time weight transform (pure function of the module's weights).

    Weights are HWIO (KH, KW, Cin, Cout); PyTorch OIHW weights must be
    transposed (2, 3, 1, 0) before calling this.  Banded weights are bf16.
    """
    w1, b1, w2, b2 = params
    w1f = _make_banded_weight(w1, W, P1, C0P).astype(jnp.bfloat16)   # (384, 128)
    w2f = _make_banded_weight(w2, W, P2, C1).astype(jnp.bfloat16)    # (896, 128)
    b1p = jnp.repeat(b1, W).reshape(1, C1 * W).astype(jnp.float32)
    b2p = jnp.repeat(b2, W).reshape(1, C2 * W).astype(jnp.float32)
    return w1f, b1p, w2f, b2p


@jax.jit
def model_forward(x_nchw, prepared):
    w1f, b1p, w2f, b2p = prepared
    N, C, H, W = x_nchw.shape
    assert C == C0 and W * C1 == 128 and H % 8 == 0, (
        "lane-dense layout assumes W == 16 and H a multiple of 8")

    kernel = functools.partial(_fused_conv_relu_kernel, N=N, H=H, W=W)
    n_pad_rows = N * (H + GAP) + GAP
    out_packed = pl.pallas_call(
        kernel,
        out_shape=jax.ShapeDtypeStruct((N * H, C2 * W), jnp.float32),
        scratch_shapes=[pltpu.VMEM((n_pad_rows, C0P * W), jnp.float32)],
    )(x_nchw, w1f, b1p, w2f, b2p)

    # (n*H + h, c*W + w) -> NCHW.  The reshape is free; this tiny (16 KiB)
    # transpose is the only remaining XLA glue.
    # TODO(synk): fold this permute into the kernel if Mosaic relayout cost is ok.
    return jnp.transpose(out_packed.reshape(N, H, C2, W), (0, 2, 1, 3))


def init_params(key):
    # Deterministic init mimicking PyTorch's default U(-1/sqrt(fan_in), +...).
    k1, k2, k3, k4 = jax.random.split(key, 4)
    bound1 = 1.0 / jnp.sqrt(C0 * K1 * K1)
    w1 = jax.random.uniform(k1, (K1, K1, C0, C1), jnp.float32, -bound1, bound1)
    b1 = jax.random.uniform(k2, (C1,), jnp.float32, -bound1, bound1)
    bound2 = 1.0 / jnp.sqrt(C1 * K2 * K2)
    w2 = jax.random.uniform(k3, (K2, K2, C1, C2), jnp.float32, -bound2, bound2)
    b2 = jax.random.uniform(k4, (C2,), jnp.float32, -bound2, bound2)
    return (w1, b1, w2, b2)


def reference_forward(x_nchw, params):
    w1, b1, w2, b2 = params

    def conv_relu(x, w, b, pad):
        y = jax.lax.conv_general_dilated(
            x, w, window_strides=(1, 1), padding=[(pad, pad), (pad, pad)],
            dimension_numbers=("NCHW", "HWIO", "NCHW"))
        return jax.nn.relu(y + b[None, :, None, None])

    return conv_relu(conv_relu(x_nchw, w1, b1, P1), w2, b2, P2)


if __name__ == "__main__":
    key = jax.random.PRNGKey(0)
    kx, kp = jax.random.split(key)
    # Small shapes consistent with the module: batch=2, Cin=3, spatial 16x16.
    x = jax.random.normal(kx, (2, 3, 16, 16), dtype=jnp.float32)   # NCHW
    params = init_params(kp)
    prepared = prepare_params(params, W=x.shape[-1])

    out = model_forward(x, prepared)
    jax.block_until_ready(out)
    assert out.shape == (2, 8, 16, 16)

    ref = reference_forward(x, params)
    max_err = float(jnp.max(jnp.abs(out - ref)))
    # bf16 banded weights / bf16 MXU operands with f32 accumulation.
    assert max_err < 2e-2, f"mismatch vs reference conv: {max_err}"
    print("KERNEL_OK")
</pallas_src>

<mosaic_0001>
module attributes {stable_mosaic.version = 11 : i64} {
  func.func @_fused_conv_relu_kernel(%arg0: memref<2x3x16x16xf32, #tpu.memory_space<vmem>>, %arg1: memref<384x128xbf16, #tpu.memory_space<vmem>>, %arg2: memref<1x128xf32, #tpu.memory_space<vmem>>, %arg3: memref<896x128xbf16, #tpu.memory_space<vmem>>, %arg4: memref<1x128xf32, #tpu.memory_space<vmem>>, %arg5: memref<32x128xf32, #tpu.memory_space<vmem>>, %arg6: memref<56x128xf32, #tpu.memory_space<vmem>>) attributes {dimension_semantics = [], scalar_prefetch = 0 : i64, scratch_operands = 1 : i64, tpu.core_type = #tpu.core_type<tc>} {
    %cst = arith.constant 0.000000e+00 : f32
    %0 = vector.broadcast %cst : f32 to vector<56x128xf32>
    %c0 = arith.constant 0 : index
    %c0_0 = arith.constant 0 : index
    %1 = vector.load %arg6[%c0, %c0_0] : memref<56x128xf32, #tpu.memory_space<vmem>>, vector<56x128xf32>
    tpu.vector_store %arg6[%c0, %c0_0], %0 {strides = array<i32>} : memref<56x128xf32, #tpu.memory_space<vmem>>, vector<56x128xf32>,
    %c0_1 = arith.constant 0 : index
    %c0_2 = arith.constant 0 : index
    %c0_3 = arith.constant 0 : index
    %c0_4 = arith.constant 0 : index
    %2 = vector.load %arg0[%c0_1, %c0_2, %c0_3, %c0_4] : memref<2x3x16x16xf32, #tpu.memory_space<vmem>>, vector<1x1x16x16xf32>
    %3 = vector.shape_cast %2 : vector<1x1x16x16xf32> to vector<16x16xf32>
    %c8 = arith.constant 8 : index
    %c0_5 = arith.constant 0 : index
    %4 = vector.load %arg6[%c8, %c0_5] : memref<56x128xf32, #tpu.memory_space<vmem>>, vector<16x16xf32>
    tpu.vector_store %arg6[%c8, %c0_5], %3 {strides = array<i32>} : memref<56x128xf32, #tpu.memory_space<vmem>>, vector<16x16xf32>,
    %c0_6 = arith.constant 0 : index
    %c1 = arith.constant 1 : index
    %c0_7 = arith.constant 0 : index
    %c0_8 = arith.constant 0 : index
    %5 = vector.load %arg0[%c0_6, %c1, %c0_7, %c0_8] : memref<2x3x16x16xf32, #tpu.memory_space<vmem>>, vector<1x1x16x16xf32>
    %6 = vector.shape_cast %5 : vector<1x1x16x16xf32> to vector<16x16xf32>
    %c8_9 = arith.constant 8 : index
    %c16 = arith.constant 16 : index
    %7 = vector.load %arg6[%c8_9, %c16] : memref<56x128xf32, #tpu.memory_space<vmem>>, vector<16x16xf32>
    tpu.vector_store %arg6[%c8_9, %c16], %6 {strides = array<i32>} : memref<56x128xf32, #tpu.memory_space<vmem>>, vector<16x16xf32>,
    %c0_10 = arith.constant 0 : index
    %c2 = arith.constant 2 : index
    %c0_11 = arith.constant 0 : index
    %c0_12 = arith.constant 0 : index
    %8 = vector.load %arg0[%c0_10, %c2, %c0_11, %c0_12] : memref<2x3x16x16xf32, #tpu.memory_space<vmem>>, vector<1x1x16x16xf32>
    %9 = vector.shape_cast %8 : vector<1x1x16x16xf32> to vector<16x16xf32>
    %c8_13 = arith.constant 8 : index
    %c32 = arith.constant 32 : index
    %10 = vector.load %arg6[%c8_13, %c32] : memref<56x128xf32, #tpu.memory_space<vmem>>, vector<16x16xf32>
    tpu.vector_store %arg6[%c8_13, %c32], %9 {strides = array<i32>} : memref<56x128xf32, #tpu.memory_space<vmem>>, vector<16x16xf32>,
    %c1_14 = arith.constant 1 : index
    %c0_15 = arith.constant 0 : index
    %c0_16 = arith.constant 0 : index
    %c0_17 = arith.constant 0 : index
    %11 = vector.load %arg0[%c1_14, %c0_15, %c0_16, %c0_17] : memref<2x3x16x16xf32, #tpu.memory_space<vmem>>, vector<1x1x16x16xf32>
    %12 = vector.shape_cast %11 : vector<1x1x16x16xf32> to vector<16x16xf32>
    %c32_18 = arith.constant 32 : index
    %c0_19 = arith.constant 0 : index
    %13 = vector.load %arg6[%c32_18, %c0_19] : memref<56x128xf32, #tpu.memory_space<vmem>>, vector<16x16xf32>
    tpu.vector_store %arg6[%c32_18, %c0_19], %12 {strides = array<i32>} : memref<56x128xf32, #tpu.memory_space<vmem>>, vector<16x16xf32>,
    %c1_20 = arith.constant 1 : index
    %c1_21 = arith.constant 1 : index
    %c0_22 = arith.constant 0 : index
    %c0_23 = arith.constant 0 : index
    %14 = vector.load %arg0[%c1_20, %c1_21, %c0_22, %c0_23] : memref<2x3x16x16xf32, #tpu.memory_space<vmem>>, vector<1x1x16x16xf32>
    %15 = vector.shape_cast %14 : vector<1x1x16x16xf32> to vector<16x16xf32>
    %c32_24 = arith.constant 32 : index
    %c16_25 = arith.constant 16 : index
    %16 = vector.load %arg6[%c32_24, %c16_25] : memref<56x128xf32, #tpu.memory_space<vmem>>, vector<16x16xf32>
    tpu.vector_store %arg6[%c32_24, %c16_25], %15 {strides = array<i32>} : memref<56x128xf32, #tpu.memory_space<vmem>>, vector<16x16xf32>,
    %c1_26 = arith.constant 1 : index
    %c2_27 = arith.constant 2 : index
    %c0_28 = arith.constant 0 : index
    %c0_29 = arith.constant 0 : index
    %17 = vector.load %arg0[%c1_26, %c2_27, %c0_28, %c0_29] : memref<2x3x16x16xf32, #tpu.memory_space<vmem>>, vector<1x1x16x16xf32>
    %18 = vector.shape_cast %17 : vector<1x1x16x16xf32> to vector<16x16xf32>
    %c32_30 = arith.constant 32 : index
    %c32_31 = arith.constant 32 : index
    %19 = vector.load %arg6[%c32_30, %c32_31] : memref<56x128xf32, #tpu.memory_space<vmem>>, vector<16x16xf32>
    tpu.vector_store %arg6[%c32_30, %c32_31], %18 {strides = array<i32>} : memref<56x128xf32, #tpu.memory_space<vmem>>, vector<16x16xf32>,
    %c7 = arith.constant 7 : index
    %c0_32 = arith.constant 0 : index
    %20 = vector.load %arg6[%c7, %c0_32] : memref<56x128xf32, #tpu.memory_space<vmem>>, vector<40x128xf32>
    %c8_33 = arith.constant 8 : index
    %c0_34 = arith.constant 0 : index
    %21 = vector.load %arg6[%c8_33, %c0_34] : memref<56x128xf32, #tpu.memory_space<vmem>>, vector<40x128xf32>
    %c9 = arith.constant 9 : index
    %c0_35 = arith.constant 0 : index
    %22 = vector.load %arg6[%c9, %c0_35] : memref<56x128xf32, #tpu.memory_space<vmem>>, vector<40x128xf32>
    %23 = tpu.concatenate %20, %21, %22 in 1 : vector<40x128xf32>, vector<40x128xf32>, vector<40x128xf32> -> vector<40x384xf32>
    %24 = arith.truncf %23 : vector<40x384xf32> to vector<40x384xbf16>
    %c0_36 = arith.constant 0 : index
    %c0_37 = arith.constant 0 : index
    %25 = vector.load %arg1[%c0_36, %c0_37] : memref<384x128xbf16, #tpu.memory_space<vmem>>, vector<384x128xbf16>
    %cst_38 = arith.constant dense<0.000000e+00> : vector<40x128xf32>
    %26 = tpu.matmul %24, %25, %cst_38 {dimension_numbers = #tpu.dot_dimension_numbers<[1], [0], [0], [1], [0, 0, 1, 1], [], []>} : vector<40x384xbf16>, vector<384x128xbf16>, vector<40x128xf32> -> vector<40x128xf32>
    %c0_39 = arith.constant 0 : index
    %c0_40 = arith.constant 0 : index
    %27 = vector.load %arg2[%c0_39, %c0_40] : memref<1x128xf32, #tpu.memory_space<vmem>>, vector<1x128xf32>
    %28 = vector.broadcast %27 : vector<1x128xf32> to vector<40x128xf32>
    %29 = arith.addf %26, %28 : vector<40x128xf32>
    %cst_41 = arith.constant 0.000000e+00 : f32
    %30 = vector.broadcast %cst_41 : f32 to vector<40x128xf32>
    %31 = arith.maximumf %29, %30 : vector<40x128xf32>
    %cst_42 = arith.constant 0.000000e+00 : f32
    %32 = vector.broadcast %cst_42 : f32 to vector<8x128xf32>
    %33 = vector.extract_strided_slice %31 {offsets = [0, 0], sizes = [16, 128], strides = [1, 1]} : vector<40x128xf32> to vector<16x128xf32>
    %34 = vector.extract_strided_slice %31 {offsets = [24, 0], sizes = [16, 128], strides = [1, 1]} : vector<40x128xf32> to vector<16x128xf32>
    %35 = tpu.concatenate %32, %33, %32, %34, %32 in 0 : vector<8x128xf32>, vector<16x128xf32>, vector<8x128xf32>, vector<16x128xf32>, vector<8x128xf32> -> vector<56x128xf32>
    %36 = vector.extract_strided_slice %35 {offsets = [5, 0], sizes = [40, 128], strides = [1, 1]} : vector<56x128xf32> to vector<40x128xf32>
    %37 = vector.extract_strided_slice %35 {offsets = [6, 0], sizes = [40, 128], strides = [1, 1]} : vector<56x128xf32> to vector<40x128xf32>
    %38 = vector.extract_strided_slice %35 {offsets = [7, 0], sizes = [40, 128], strides = [1, 1]} : vector<56x128xf32> to vector<40x128xf32>
    %39 = vector.extract_strided_slice %35 {offsets = [8, 0], sizes = [40, 128], strides = [1, 1]} : vector<56x128xf32> to vector<40x128xf32>
    %40 = vector.extract_strided_slice %35 {offsets = [9, 0], sizes = [40, 128], strides = [1, 1]} : vector<56x128xf32> to vector<40x128xf32>
    %41 = vector.extract_strided_slice %35 {offsets = [10, 0], sizes = [40, 128], strides = [1, 1]} : vector<56x128xf32> to vector<40x128xf32>
    %42 = vector.extract_strided_slice %35 {offsets = [11, 0], sizes = [40, 128], strides = [1, 1]} : vector<56x128xf32> to vector<40x128xf32>
    %43 = tpu.concatenate %36, %37, %38, %39, %40, %41, %42 in 1 : vector<40x128xf32>, vector<40x128xf32>, vector<40x128xf32>, vector<40x128xf32>, vector<40x128xf32>, vector<40x128xf32>, vector<40x128xf32> -> vector<40x896xf32>
    %44 = arith.truncf %43 : vector<40x896xf32> to vector<40x896xbf16>
    %c0_43 = arith.constant 0 : index
    %c0_44 = arith.constant 0 : index
    %45 = vector.load %arg3[%c0_43, %c0_44] : memref<896x128xbf16, #tpu.memory_space<vmem>>, vector<896x128xbf16>
    %cst_45 = arith.constant dense<0.000000e+00> : vector<40x128xf32>
    %46 = tpu.matmul %44, %45, %cst_45 {dimension_numbers = #tpu.dot_dimension_numbers<[1], [0], [0], [1], [0, 0, 1, 1], [], []>} : vector<40x896xbf16>, vector<896x128xbf16>, vector<40x128xf32> -> vector<40x128xf32>
    %c0_46 = arith.constant 0 : index
    %c0_47 = arith.constant 0 : index
    %47 = vector.load %arg4[%c0_46, %c0_47] : memref<1x128xf32, #tpu.memory_space<vmem>>, vector<1x128xf32>
    %48 = vector.broadcast %47 : vector<1x128xf32> to vector<40x128xf32>
    %49 = arith.addf %46, %48 : vector<40x128xf32>
    %cst_48 = arith.constant 0.000000e+00 : f32
    %50 = vector.broadcast %cst_48 : f32 to vector<40x128xf32>
    %51 = arith.maximumf %49, %50 : vector<40x128xf32>
    %52 = vector.extract_strided_slice %51 {offsets = [0, 0], sizes = [16, 128], strides = [1, 1]} : vector<40x128xf32> to vector<16x128xf32>
    %c0_49 = arith.constant 0 : index
    %c0_50 = arith.constant 0 : index
    %53 = vector.load %arg5[%c0_49, %c0_50] : memref<32x128xf32, #tpu.memory_space<vmem>>, vector<16x128xf32>
    tpu.vector_store %arg5[%c0_49, %c0_50], %52 {strides = array<i32>} : memref<32x128xf32, #tpu.memory_space<vmem>>, vector<16x128xf32>,
    %54 = vector.extract_strided_slice %51 {offsets = [24, 0], sizes = [16, 128], strides = [1, 1]} : vector<40x128xf32> to vector<16x128xf32>
    %c16_51 = arith.constant 16 : index
    %c0_52 = arith.constant 0 : index
    %55 = vector.load %arg5[%c16_51, %c0_52] : memref<32x128xf32, #tpu.memory_space<vmem>>, vector<16x128xf32>
    tpu.vector_store %arg5[%c16_51, %c0_52], %54 {strides = array<i32>} : memref<32x128xf32, #tpu.memory_space<vmem>>, vector<16x128xf32>,
    return
  }
}

</mosaic_0001>

<bundles_post_ra>
// kernel: model_forward.1
= control target key start
LH: loop header
LB: loop body
LE: loop exit
PB: predicated region body
PF: predicated region fallthrough
CT: control target
= control target key end

     0   :  { %10 = vsyncpa [#allocation4], 0  ;;  %s2217_s0 = inlined_call_operand.hbm [shape: f32[2,3,16,16], index: 0, kind: input, shape index: {}]   ;;  %s2218_s1 = inlined_call_operand.hbm [shape: bf16[384,128], index: 1, kind: input, shape index: {}]   ;;  %s2219_s2 = inlined_call_operand.vmem [shape: f32[1,128], index: 2, kind: input, shape index: {}]   ;;  %s2220_s3 = inlined_call_operand.hbm [shape: bf16[896,128], index: 3, kind: input, shape index: {}]   ;;  %s2221_s4 = inlined_call_operand.vmem [shape: f32[1,128], index: 4, kind: input, shape index: {}]   ;;  %s2222_s5 = inlined_call_operand.vmem [shape: f32[32,128], index: 5, kind: output, shape index: {}]  }
   0x1   :  { %11 = vsyncpa [#allocation6], 0  ;;  %s1942_s18 = smov [#allocation5]  }
   0x2   :  { %s29_s19 = sshll.u32 %s1942_s18, 4  ;;  %s30_s19 = int_to_ptr.vmem [resolvable:$true] %s29_s19 }
   0x3   :  { %s1886_s20 = scalar_lea.vmem %s30_s19, 3072  ;;  %p1891_p1 = scmp.lt.s32.totalorder %s30_s19, %s30_s19 }
   0x4   :  { %p1887_p0 = scmp.ne.s32.totalorder %s30_s19, %s1886_s20  ;;  %p1892_p2 = scmp.lt.s32.totalorder %s1886_s20, %s1886_s20 }
   0x6   :  { %p1893_p3 = por %p1892_p2, %p1891_p1 }
   0x8   :  { %p1894_p4 = pnand %p1893_p3, %p1887_p0 }
   0xa   :  { %1897 = shalt.err (!%p1894_p4)
}
   0xb   :  { %s1943_s21 = smov 64   ;;  %s1944_s22 = smov 4  }
   0xc   :  { %35 = dma.hbm_to_vmem [thread:$0]  %s2218_s1, 3072, %s30_s19, [#allocation6], %s1943_s21, %s1943_s21, %s1944_s22  }
   0xd   :  { %s1945_s25 = smov [#allocation3]  }
   0xe   :  { %s17_s26 = sshll.u32 %s1945_s25, 4  ;;  %s18_s26 = int_to_ptr.vmem [resolvable:$true] %s17_s26 }
   0xf   :  { %s1906_s27 = scalar_lea.vmem %s18_s26, 1536  ;;  %p1911_p6 = scmp.lt.s32.totalorder %s18_s26, %s18_s26 }
  0x10   :  { %p1907_p5 = scmp.ne.s32.totalorder %s18_s26, %s1906_s27  ;;  %p1912_p7 = scmp.lt.s32.totalorder %s1906_s27, %s1906_s27 }
  0x12   :  { %p1913_p8 = por %p1912_p7, %p1911_p6 }
  0x14   :  { %p1914_p9 = pnand %p1913_p8, %p1907_p5 }
  0x16   :  { %1917 = shalt.err (!%p1914_p9)
}
  0x17   :  { %s1946_s28 = smov 128   ;;  %s1947_s29 = smov 8  }
  0x18   :  { %23 = dma.hbm_to_vmem [thread:$0]  %s2217_s0, 1536, %s18_s26, [#allocation4], %s1946_s28, %s1946_s28, %s1947_s29  }
  0x19   :  { %s1948_s7 = smov [#allocation7]  }
  0x1a   :  { %s43_s8 = sshll.u32 %s1948_s7, 4  ;;  %s44_s8 = int_to_ptr.vmem [resolvable:$true] %s43_s8 }
  0x1b   :  { %s1926_s1 = scalar_lea.vmem %s44_s8, 7168  ;;  %p1931_p11 = scmp.lt.s32.totalorder %s44_s8, %s44_s8 }
  0x1c   :  { %p1927_p10 = scmp.ne.s32.totalorder %s44_s8, %s1926_s1  ;;  %p1932_p12 = scmp.lt.s32.totalorder %s1926_s1, %s1926_s1 }
  0x1e   :  { %p1933_p13 = por %p1932_p12, %p1931_p11 }
  0x20   :  { %p1934_p0 = pnand %p1933_p13, %p1927_p10 }
  0x22   :  { %1937 = shalt.err (!%p1934_p0)
}
  0x23   :  { %49 = dma.hbm_to_vmem [thread:$0]  %s2220_s3, 7168, %s44_s8, [#allocation6], %s1943_s21, %s1943_s21, %s1944_s22  }
  0x24   :  { %1938 = dma.done.wait [#allocation4], 1536  }
  0x25   :  { %1939 = vsyncadd [#allocation4], 4294965760 }
  0x26   :  { %1940 = dma.done.wait [#allocation6], 10240  }
  0x27   :  { %1941 = vsyncadd [#allocation6], 4294957056  ;;  %v1949_v0 = vmov 0.0   ;;  %v75_v1 = vld [vmem:[#allocation3 + $0x10] sm:$0xff]  ;;  %v89_v2 = vld [vmem:[#allocation3 + $0x20] sm:$0xff]  ;;  %s1950_s0 = smov 16  }
  0x28   :  { %1730 = vmatprep.subr.bf16.mxu1 %v1949_v0  ;;  %62 = vst [vmem:[#allocation2] sm:$0xff] %v1949_v0  ;;  %63 = vst [vmem:[#allocation2 + $0x8] sm:$0xff] %v1949_v0  ;;  %79 = vrot.lane.b32.xlu0 %v75_v1, %s1950_s0  ;;  %s1951_s3 = smov 32   ;;  %v76_v3 = vld [vmem:[#allocation3 + $0x18] sm:$0xff]  ;;  %v90_v4 = vld [vmem:[#allocation3 + $0x28] sm:$0xff]  ;;  %vm1952_vm0 = vmmov 0  }
  0x29   :  { %64 = vst [vmem:[#allocation2 + $0x10] sm:$0xff] %v1949_v0  ;;  %65 = vst [vmem:[#allocation2 + $0x18] sm:$0xff] %v1949_v0  ;;  %93 = vrot.lane.b32.xlu1 %v89_v2, %s1951_s3  ;;  %1746 = vmatprep.mubr.msk.bf16.mxu1 %vm1952_vm0, %v1949_v0  ;;  %v1797_v5 = vld [vmem:[#allocation5 + $0x78] sm:$0xff]   ;;  %v108_v6 = vld [vmem:[#allocation3 + $0x40] sm:$0xff]  ;;  %vm71_vm1 = vcmask 130048   ;;  %vm85_vm2 = vcmask 261248  }
  0x2a   :  { %66 = vst [vmem:[#allocation2 + $0x20] sm:$0xff] %v1949_v0  ;;  %67 = vst [vmem:[#allocation2 + $0x28] sm:$0xff] %v1949_v0  ;;  %v121_v7 = vld [vmem:[#allocation3 + $0x50] sm:$0xff]  ;;  %v1798_v8 = vld [vmem:[#allocation5 + $0xb8] sm:$0xff]   ;;  %1572 = vmatprep.subr.bf16.mxu0 %v1797_v5  ;;  %vm99_vm3 = vcmask 392448   ;;  %vm475_vm4 = vcmask 1046528  }
  0x2b   :  { %68 = vst [vmem:[#allocation2 + $0x30] sm:$0xff] %v1949_v0  ;;  %v1799_v9 = vld [vmem:[#allocation5 + $0x38] sm:$0xff]   ;;  %1731 = vmatpush3.bf16.msra.mxu1 %v1798_v8  ;;  %v1800_v10 = vld [vmem:[#allocation5 + $0x70] sm:$0xff]   ;;  %v109_v12 = vld [vmem:[#allocation3 + $0x48] sm:$0xff]  ;;  %vm492_vm5 = vcmask 1045504   ;;  %vm509_vm6 = vcmask 1044480  }
  0x2c   :  { %81 = vrot.lane.b32.xlu0 %v76_v3, %s1950_s0  ;;  %1573 = vmatpush3.bf16.msra.mxu0 %v1799_v9  ;;  %v1801_v11 = vld [vmem:[#allocation5 + $0xb0] sm:$0xff]   ;;  %v122_v13 = vld [vmem:[#allocation3 + $0x58] sm:$0xff]  ;;  %v1803_v15 = vld [vmem:[#allocation5 + $0x68] sm:$0xff]   ;;  %vm716_vm7 = vsmask.f32 5376  ;;  %vm542_vm8 = vcmask 1042432  }
  0x2d   :  { %95 = vrot.lane.b32.xlu1 %v90_v4, %s1951_s3  ;;  %1732 = vmatprep.subr.bf16.mxu1 %v1949_v0  ;;  %v1802_v14 = vld [vmem:[#allocation5 + $0x30] sm:$0xff]   ;;  %v1804_v16 = vld [vmem:[#allocation5 + $0xa8] sm:$0xff]   ;;  %v1806_v18 = vld [vmem:[#allocation5 + $0x60] sm:$0xff]   ;;  %vm525_vm9 = vcmask 1043456   ;;  %vm559_vm10 = vcmask 1041408  }
  0x2e   :  { %1574 = vmatprep.subr.bf16.mxu0 %v1800_v10  ;;  %v1805_v17 = vld [vmem:[#allocation5 + $0x28] sm:$0xff]   ;;  %v1807_v19 = vld [vmem:[#allocation5 + $0xa0] sm:$0xff]   ;;  %v1809_v22 = vld [vmem:[#allocation5 + $0x58] sm:$0xff]  }
  0x2f   :  { %1733 = vmatpush3.bf16.msra.mxu1 %v1801_v11  ;;  %v69_v20 = vld [vmem:[#allocation3] sm:$0xff]  ;;  %v1810_v23 = vld [vmem:[#allocation5 + $0x98] sm:$0xff]   ;;  %v70_v24 = vld [vmem:[#allocation3 + $0x8] sm:$0xff] }
  0x30   :  { %112 = vrot.lane.b32.xlu0 %v108_v6, %s1950_s0  ;;  %1575 = vmatpush3.bf16.msra.mxu0 %v1802_v14  ;;  %v1808_v21 = vld [vmem:[#allocation5 + $0x20] sm:$0xff]   ;;  %72 = vst.msk [vmem:[#allocation2 + $0x8] sm:$0xff] %vm71_vm1, %v69_v20  ;;  %v1811_v25 = vld [vmem:[#allocation5 + $0x18] sm:$0xff]   ;;  %73 = vst.msk [vmem:[#allocation2 + $0x10] sm:$0xff] %vm71_vm1, %v70_v24 }
  0x31   :  { %125 = vrot.lane.b32.xlu1 %v121_v7, %s1951_s3  ;;  %1734 = vmatprep.subr.bf16.mxu1 %v1949_v0  ;;  %v1812_v26 = vld [vmem:[#allocation5 + $0x50] sm:$0xff]   ;;  %v1815_v30 = vld [vmem:[#allocation5 + $0x48] sm:$0xff]   ;;  %v104_v31 = vld [vmem:[#allocation3 + $0x38] sm:$0xff] }
  0x32   :  { %1576 = vmatprep.subr.bf16.mxu0 %v1803_v15  ;;  %v103_v27 = vld [vmem:[#allocation3 + $0x30] sm:$0xff]  ;;  %v1816_v32 = vld [vmem:[#allocation5 + $0x88] sm:$0xff]   ;;  %106 = vst.msk [vmem:[#allocation2 + $0x28] sm:$0xff] %vm71_vm1, %v104_v31  ;;  %v1818_v34 = vld [vmem:[#allocation5 + $0x40] sm:$0xff]  }
  0x33   :  { %1735 = vmatpush3.bf16.msra.mxu1 %v1804_v16  ;;  %v1813_v28 = vld [vmem:[#allocation5 + $0x90] sm:$0xff]   ;;  %105 = vst.msk [vmem:[#allocation2 + $0x20] sm:$0xff] %vm71_vm1, %v103_v27  ;;  %v1817_v33 = vld [vmem:[#allocation5 + $0x8] sm:$0xff]   ;;  %v1819_v35 = vld [vmem:[#allocation5 + $0x80] sm:$0xff]  }
  0x34   :  { %114 = vrot.lane.b32.xlu0 %v109_v12, %s1950_s0  ;;  %1577 = vmatpush3.bf16.msra.mxu0 %v1805_v17  ;;  %v1814_v29 = vld [vmem:[#allocation5 + $0x10] sm:$0xff]   ;;  %v1820_v36 = vld [vmem:[#allocation5] sm:$0xff]   ;;  %v1821_v5 = vld [vmem:[#allocation7 + $0x78] sm:$0xff]  }
  0x35   :  { %127 = vrot.lane.b32.xlu1 %v122_v13, %s1951_s3  ;;  %1736 = vmatprep.subr.bf16.mxu1 %v1949_v0  ;;  %v1822_v6 = vld [vmem:[#allocation7 + $0xf8] sm:$0xff]   ;;  %v1825_v9 = vld [vmem:[#allocation7 + $0x70] sm:$0xff]   ;;  %v1829_v13 = vld [vmem:[#allocation7 + $0x68] sm:$0xff]  }
  0x36   :  { %1578 = vmatprep.subr.bf16.mxu0 %v1806_v18  ;;  %v1823_v7 = vld [vmem:[#allocation7 + $0x38] sm:$0xff]   ;;  %v1826_v10 = vld [vmem:[#allocation7 + $0xf0] sm:$0xff]   ;;  %v1830_v14 = vld [vmem:[#allocation7 + $0xe8] sm:$0xff]  }
  0x37   :  { %1737 = vmatpush3.bf16.msra.mxu1 %v1807_v19  ;;  %v1824_v8 = vld [vmem:[#allocation7 + $0xb8] sm:$0xff]   ;;  %v1827_v11 = vld [vmem:[#allocation7 + $0x30] sm:$0xff]   ;;  %v1831_v15 = vld [vmem:[#allocation7 + $0x28] sm:$0xff]  }
  0x38   :  { %1579 = vmatpush3.bf16.msra.mxu0 %v1808_v21  ;;  %1738 = vmatprep.subr.bf16.mxu1 %v1949_v0  ;;  %v1828_v12 = vld [vmem:[#allocation7 + $0xb0] sm:$0xff]   ;;  %v1832_v16 = vld [vmem:[#allocation7 + $0xa8] sm:$0xff]   ;;  %v1833_v17 = vld [vmem:[#allocation7 + $0x60] sm:$0xff]  }
  0x39   :  { %1580 = vmatprep.subr.bf16.mxu0 %v1809_v22  ;;  %v1834_v18 = vld [vmem:[#allocation7 + $0xe0] sm:$0xff]   ;;  %v1837_v21 = vld [vmem:[#allocation7 + $0x58] sm:$0xff]   ;;  %v1843_v27 = vld [vmem:[#allocation7 + $0x10] sm:$0xff]  }
  0x3a   :  { %v1835_v19 = vld [vmem:[#allocation7 + $0x20] sm:$0xff]   ;;  %v1838_v22 = vld [vmem:[#allocation7 + $0xd8] sm:$0xff]   ;;  %v1847_v31 = vld [vmem:[#allocation7 + $0x8] sm:$0xff]  }
  0x3b   :  { %1739 = vmatpush3.bf16.msra.mxu1 %v1810_v23  ;;  %v1836_v20 = vld [vmem:[#allocation7 + $0xa0] sm:$0xff]   ;;  %v1839_v23 = vld [vmem:[#allocation7 + $0x18] sm:$0xff]  }
  0x3c   :  { %1581 = vmatpush3.bf16.msra.mxu0 %v1811_v25  ;;  %1740 = vmatprep.subr.bf16.mxu1 %v1949_v0  ;;  %v1840_v24 = vld [vmem:[#allocation7 + $0x98] sm:$0xff]   ;;  %v1841_v25 = vld [vmem:[#allocation7 + $0x50] sm:$0xff]  }
  0x3d   :  { %1582 = vmatprep.subr.bf16.mxu0 %v1812_v26  ;;  %v1842_v26 = vld [vmem:[#allocation7 + $0xd0] sm:$0xff]  }
  0x3f   :  { %1741 = vmatpush3.bf16.msra.mxu1 %v1813_v28  ;;  %v1844_v28 = vld [vmem:[#allocation7 + $0x90] sm:$0xff]  }
  0x40   :  { %1583 = vmatpush3.bf16.msra.mxu0 %v1814_v29  ;;  %1742 = vmatprep.subr.bf16.mxu1 %v1949_v0  ;;  %v1845_v29 = vld [vmem:[#allocation7 + $0x48] sm:$0xff]  }
  0x41   :  { %1584 = vmatprep.subr.bf16.mxu0 %v1815_v30  ;;  %v1846_v30 = vld [vmem:[#allocation7 + $0xc8] sm:$0xff]  }
  0x43   :  { %1743 = vmatpush3.bf16.msra.mxu1 %v1816_v32  ;;  %v1848_v32 = vld [vmem:[#allocation7 + $0x88] sm:$0xff]  }
  0x44   :  { %1585 = vmatpush3.bf16.msra.mxu0 %v1817_v33  ;;  %1744 = vmatprep.subr.bf16.mxu1 %v1949_v0  ;;  %v1849_v33 = vld [vmem:[#allocation7 + $0x40] sm:$0xff]  }
  0x45   :  { %1586 = vmatprep.subr.bf16.mxu0 %v1818_v34  ;;  %v1850_v34 = vld [vmem:[#allocation7 + $0xc0] sm:$0xff]  }
  0x47   :  { %1745 = vmatpush3.bf16.msra.mxu1 %v1819_v35  ;;  %v1851_v35 = vld [vmem:[#allocation7] sm:$0xff]  }
  0x48   :  { %1587 = vmatpush3.bf16.msra.mxu0 %v1820_v36  ;;  %1651 = vmatprep.subr.bf16.mxu1 %v1822_v6  ;;  %v1852_v36 = vld [vmem:[#allocation7 + $0x80] sm:$0xff]  }
  0x49   :  { %1617 = vmatprep.subr.bf16.mxu0 %v1821_v5 }
  0x9a   :  { %v80_v37 = vpop.permute.xlu0 %79 }
  0x9b   :  { %v94_v38 = vpop.permute.xlu1 %93  ;;  %86 = vst.msk [vmem:[#allocation2 + $0x8] sm:$0xff] %vm85_vm2, %v80_v37  ;;  %v1853_v37 = vld [vmem:[#allocation7 + $0x178] sm:$0xff]  }
  0x9c   :  { %100 = vst.msk [vmem:[#allocation2 + $0x8] sm:$0xff] %vm99_vm3, %v94_v38 }
  0x9e   :  { %v82_v39 = vpop.permute.xlu0 %81 }
  0x9f   :  { %v96_v40 = vpop.permute.xlu1 %95  ;;  %87 = vst.msk [vmem:[#allocation2 + $0x10] sm:$0xff] %vm85_vm2, %v82_v39 }
  0xa0   :  { %101 = vst.msk [vmem:[#allocation2 + $0x10] sm:$0xff] %vm99_vm3, %v96_v40 }
  0xa2   :  { %v113_v41 = vpop.permute.xlu0 %112 }
  0xa3   :  { %v126_v42 = vpop.permute.xlu1 %125  ;;  %118 = vst.msk [vmem:[#allocation2 + $0x20] sm:$0xff] %vm85_vm2, %v113_v41  ;;  %v138_v45 = vld [vmem:[#allocation2 + $0x8] sm:$0xff]  ;;  %v2038_v41 = vld [vmem:[%s2219_s2] ss:$0 sm:$0xff] }
  0xa4   :  { %131 = vst.msk [vmem:[#allocation2 + $0x20] sm:$0xff] %vm99_vm3, %v126_v42  ;;  %v133_v51 = vld [vmem:[#allocation2 + $0x7] sm:$0xff] }
  0xa6   :  { %v115_v43 = vpop.permute.xlu0 %114 }
  0xa7   :  { %v128_v44 = vpop.permute.xlu1 %127  ;;  %119 = vst.msk [vmem:[#allocation2 + $0x28] sm:$0xff] %vm85_vm2, %v115_v43  ;;  %v139_v46 = vld [vmem:[#allocation2 + $0x10] sm:$0xff] }
  0xa8   :  { %v143_v47 = vld [vmem:[#allocation2 + $0x9] sm:$0xff]  ;;  %v144_v48 = vld [vmem:[#allocation2 + $0x11] sm:$0xff]  ;;  %132 = vst.msk [vmem:[#allocation2 + $0x28] sm:$0xff] %vm99_vm3, %v128_v44  ;;  %v149_v49 = vpack.c.bf16 %v139_v46, %v138_v45 }
  0xa9   :  { %v150_v50 = vpack.c.bf16 %v144_v48, %v143_v47  ;;  %v134_v52 = vld [vmem:[#allocation2 + $0xf] sm:$0xff]  ;;  %v135_v61 = vld [vmem:[#allocation2 + $0x17] sm:$0xff] }
  0xaa   :  { %v148_v53 = vpack.c.bf16 %v134_v52, %v133_v51  ;;  %388 = vmatprep.mubr.bf16.mxu0 %v149_v49 }
  0xab   :  { %1747 = vmatmul.mubr.bf16.vlgmr.msra.gmra.mxu1 %v150_v50  ;;  %v141_v54 = vld [vmem:[#allocation2 + $0x20] sm:$0xff] }
  0xac   :  { %389 = vmatmul.mubr.bf16.vlgmr.msra.gmra.mxu0 %v148_v53  ;;  %1750 = vmatprep.mubr.msk.bf16.mxu1 %vm1952_vm0, %v1949_v0  ;;  %v152_v55 = vpack.c.bf16 %v141_v54, %v1949_v0  ;;  %v145_v56 = vld [vmem:[#allocation2 + $0x19] sm:$0xff] }
  0xad   :  { %v136_v57 = vld [vmem:[#allocation2 + $0x1f] sm:$0xff]  ;;  %1618 = vmatpush3.bf16.msra.mxu0 %v1823_v7  ;;  %1652 = vmatpush3.bf16.msra.mxu1 %v1824_v8 }
  0xae   :  { %396 = vmatprep.mubr.bf16.mxu0 %v152_v55  ;;  %v151_v63 = vpack.c.bf16 %v136_v57, %v135_v61  ;;  %1619 = vmatprep.subr.bf16.mxu0 %v1825_v9  ;;  %v2045_v57 = vrot.slane %v1949_v0, 1 }
  0xaf   :  { %v146_v58 = vld [vmem:[#allocation2 + $0x21] sm:$0xff]  ;;  %v147_v1 = vld [vmem:[#allocation2 + $0x29] sm:$0xff]  ;;  %1653 = vmatprep.subr.bf16.mxu1 %v1826_v10 }
  0xb0   :  { %v142_v59 = vld [vmem:[#allocation2 + $0x28] sm:$0xff]  ;;  %v153_v60 = vpack.c.bf16 %v146_v58, %v145_v56  ;;  %v156_v2 = vpack.c.bf16 %v147_v1, %v147_v1  ;;  %v2054_v1 = vrot.slane %v1949_v0, 2 }
  0xb1   :  { %v155_v62 = vpack.c.bf16 %v142_v59, %v142_v59  ;;  %v137_v3 = vld [vmem:[#allocation2 + $0x27] sm:$0xff]  ;;  %1620 = vmatpush3.bf16.msra.mxu0 %v1827_v11  ;;  %1654 = vmatpush3.bf16.msra.mxu1 %v1828_v12  ;;  %v2064_v11 = vrot.slane %v1949_v0, 5 }
  0xb2   :  { %v154_v4 = vpack.c.bf16 %v137_v3, %v137_v3  ;;  %1621 = vmatprep.subr.bf16.mxu0 %v1829_v13  ;;  %1655 = vmatprep.subr.bf16.mxu1 %v1830_v14 }
  0xb3   :  { %1751 = vmatmul.mubr.bf16.gmra.mxu1 %v153_v60 }
  0xb4   :  { %397 = vmatmul.mubr.bf16.gmra.mxu0 %v151_v63  ;;  %1754 = vmatprep.mubr.msk.bf16.mxu1 %vm1952_vm0, %v1949_v0  ;;  %v2051_v63 = vrot.slane %v1949_v0, 3 }
  0xb5   :  { %403 = vmatprep.mubr.bf16.mxu0 %v155_v62  ;;  %1622 = vmatpush3.bf16.msra.mxu0 %v1831_v15 }
  0xb6   :  { %1656 = vmatpush3.bf16.msra.mxu1 %v1832_v16  ;;  %1623 = vmatprep.subr.bf16.mxu0 %v1833_v17 }
  0xb7   :  { %1657 = vmatprep.subr.bf16.mxu1 %v1834_v18 }
  0xb9   :  { %1624 = vmatpush3.bf16.msra.mxu0 %v1835_v19 }
  0xba   :  { %1658 = vmatpush3.bf16.msra.mxu1 %v1836_v20  ;;  %1625 = vmatprep.subr.bf16.mxu0 %v1837_v21 }
  0xbb   :  { %1755 = vmatmul.mubr.bf16.gmra.mxu1 %v156_v2  ;;  %1659 = vmatprep.subr.bf16.mxu1 %v1838_v22 }
  0xbc   :  { %404 = vmatmul.mubr.bf16.gmra.mxu0 %v154_v4 }
  0xbd   :  { %1626 = vmatpush3.bf16.msra.mxu0 %v1839_v23 }
  0xbe   :  { %1660 = vmatpush3.bf16.msra.mxu1 %v1840_v24  ;;  %1627 = vmatprep.subr.bf16.mxu0 %v1841_v25 }
  0xbf   :  { %1661 = vmatprep.subr.bf16.mxu1 %v1842_v26 }
  0xc1   :  { %1628 = vmatpush3.bf16.msra.mxu0 %v1843_v27 }
  0xc2   :  { %1662 = vmatpush3.bf16.msra.mxu1 %v1844_v28  ;;  %1629 = vmatprep.subr.bf16.mxu0 %v1845_v29 }
  0xc3   :  { %1663 = vmatprep.subr.bf16.mxu1 %v1846_v30 }
  0xc5   :  { %1630 = vmatpush3.bf16.msra.mxu0 %v1847_v31 }
  0xc6   :  { %1664 = vmatpush3.bf16.msra.mxu1 %v1848_v32  ;;  %1631 = vmatprep.subr.bf16.mxu0 %v1849_v33 }
  0xc7   :  { %1665 = vmatprep.subr.bf16.mxu1 %v1850_v34 }
  0xc9   :  { %1632 = vmatpush3.bf16.msra.mxu0 %v1851_v35 }
  0xca   :  { %1666 = vmatpush3.bf16.msra.mxu1 %v1852_v36  ;;  %1685 = vmatprep.subr.bf16.mxu0 %v1853_v37 }
  0xcb   :  { %1758 = vmatprep.subr.bf16.mxu1 %v1949_v0 }
 0x16b   :  { %v445_v38 = vpop.f32.mrf.mxu1 }
 0x16c   :  { %v1588_v39 = vpop.f32.mrf.mxu0 }
 0x16d   :  { %v1748_v40 = vpop.f32.mrf.mxu1 }
 0x16e   :  { %v1589_v42 = vpop.f32.mrf.mxu0 }
 0x16f   :  { %v1590_v43 = vadd.f32 %v1589_v42, %v1588_v39  ;;  %v448_v44 = vpop.f32.mrf.mxu1 }
 0x170   :  { %v1591_v45 = vpop.f32.mrf.mxu0 }
 0x171   :  { %v391_v46 = vadd.f32 %v1590_v43, %v2038_v41  ;;  %v1749_v47 = vpop.f32.mrf.mxu1 }
 0x172   :  { %v1592_v48 = vpop.f32.mrf.mxu0 }
 0x173   :  { %v446_v49 = vadd.f32 %v445_v38, %v391_v46  ;;  %v1593_v50 = vadd.f32 %v1592_v48, %v1591_v45  ;;  %v453_v51 = vpop.f32.mrf.mxu1 }
 0x174   :  { %v1594_v52 = vpop.f32.mrf.mxu0 }
 0x175   :  { %v2041_v53 = vmax.f32 %v446_v49, 0.0  ;;  %v394_v54 = vadd.f32 %v1593_v50, %v2038_v41  ;;  %v1752_v55 = vpop.f32.mrf.mxu1 }
 0x176   :  { %v1595_v56 = vpop.f32.mrf.mxu0 }
 0x177   :  { %v449_v58 = vadd.f32 %v448_v44, %v394_v54  ;;  %v455_v59 = vpop.f32.mrf.mxu1  ;;  %v477_v60 = vrot.slane %v2041_v53, 1  ;;  %v576_v61 = vpack.c.bf16 %v2041_v53, %v1949_v0  ;;  %v494_v2 = vrot.slane %v2041_v53, 2 }
 0x178   :  { %v1597_v62 = vpop.f32.mrf.mxu0  ;;  %v510_v9 = vrot.slane %v2041_v53, 3  ;;  %v543_v10 = vrot.slane %v2041_v53, 5 }
 0x179   :  { %v2057_v3 = vmax.f32 %v449_v58, 0.0  ;;  %v1753_v4 = vpop.f32.mrf.mxu1  ;;  %v718_v5 = vshrl.u32 %v576_v61, 16  ;;  %v721_v6 = vshll.u32 %v576_v61, 16  ;;  %v478_v8 = vsel %vm475_vm4, %v2045_v57, %v477_v60 }
 0x17a   :  { %v1598_v7 = vpop.f32.mrf.mxu0  ;;  %v495_v20 = vsel %vm492_vm5, %v2054_v1, %v494_v2 }
 0x17b   :  { %v1599_v12 = vadd.f32 %v1598_v7, %v1597_v62  ;;  %v460_v13 = vpop.f32.mrf.mxu1  ;;  %v479_v14 = vrot.slane %v2057_v3, 1  ;;  %v511_v15 = vrot.slane %v2057_v3, 3  ;;  %v583_v16 = vpack.c.bf16 %v1949_v0, %v2057_v3 }
 0x17c   :  { %v1600_v17 = vpop.f32.mrf.mxu0  ;;  %v720_v18 = vrot.slane %v718_v5, 2  ;;  %v723_v19 = vrot.slane %v721_v6, 3  ;;  %v496_v21 = vrot.slane %v2057_v3, 2  ;;  %v544_v26 = vrot.slane %v2057_v3, 5 }
 0x17d   :  { %v401_v22 = vadd.f32 %v1599_v12, %v2038_v41  ;;  %v1756_v23 = vpop.f32.mrf.mxu1  ;;  %v480_v24 = vsel %vm475_vm4, %v477_v60, %v479_v14  ;;  %v512_v25 = vsel %vm509_vm6, %v510_v9, %v511_v15  ;;  %v481_v0 = vsel %vm475_vm4, %v479_v14, %v2045_v57 }
 0x17e   :  { %v1601_v27 = vpop.f32.mrf.mxu0  ;;  %v577_v28 = vpack.c.bf16 %v480_v24, %v478_v8  ;;  %v514_v29 = vsel %vm509_vm6, %v511_v15, %v2051_v63  ;;  %v579_v30 = vpack.c.bf16 %v512_v25, %v510_v9  ;;  %v726_v34 = vshrl.u32 %v583_v16, 16 }
 0x17f   :  { %v456_v31 = vadd.f32 %v455_v59, %v401_v22  ;;  %v1602_v32 = vadd.f32 %v1601_v27, %v1600_v17  ;;  %v463_v33 = vpop.f32.mrf.mxu1  ;;  %v729_v35 = vshll.u32 %v583_v16, 16  ;;  %v724_v60 = vor.u32 %v723_v19, %v720_v18 }
 0x180   :  { %v1603_v36 = vpop.f32.mrf.mxu0  ;;  %v735_v37 = vshrl.u32 %v577_v28, 16  ;;  %v738_v38 = vshll.u32 %v577_v28, 16  ;;  %v769_v39 = vshrl.u32 %v579_v30, 16  ;;  %v772_v40 = vshll.u32 %v579_v30, 16 }
 0x181   :  { %v2081_v42 = vmax.f32 %v456_v31, 0.0  ;;  %v406_v43 = vadd.f32 %v1602_v32, %v2038_v41  ;;  %v1757_v44 = vpop.f32.mrf.mxu1  ;;  %v728_v45 = vrot.slane %v726_v34, 2  ;;  %v731_v46 = vrot.slane %v729_v35, 3  ;;  %v1854_v35 = vld [vmem:[#allocation7 + $0x138] sm:$0xff]  }
 0x182   :  { %v1604_v47 = vpop.f32.mrf.mxu0  ;;  %v737_v48 = vrot.slane %v735_v37, 2  ;;  %v740_v49 = vrot.slane %v738_v38, 3  ;;  %v771_v50 = vrot.slane %v769_v39, 2  ;;  %v774_v51 = vrot.slane %v772_v40, 3 }
 0x183   :  { %v461_v52 = vadd.f32 %v460_v13, %v406_v43  ;;  %v482_v54 = vrot.slane %v2081_v42, 1  ;;  %v515_v55 = vrot.slane %v2081_v42, 3  ;;  %v2086_v56 = vor.u32 %v731_v46, %v728_v45  ;;  %v1856_v43 = vld [vmem:[#allocation7 + $0x170] sm:$0xff]  }
 0x184   :  { %v741_v58 = vor.u32 %v740_v49, %v737_v48  ;;  %v775_v59 = vor.u32 %v774_v51, %v771_v50  ;;  %v497_v41 = vsel %vm492_vm5, %v494_v2, %v496_v21  ;;  %v498_v5 = vsel %vm492_vm5, %v496_v21, %v2054_v1 }
 0x185   :  { %v2089_v61 = vmax.f32 %v461_v52, 0.0  ;;  %v483_v62 = vsel %vm475_vm4, %v2045_v57, %v482_v54  ;;  %v516_v4 = vsel %vm509_vm6, %v2051_v63, %v515_v55  ;;  %v499_v8 = vrot.slane %v2081_v42, 2 }
 0x186   :  { %v584_v6 = vpack.c.bf16 %v483_v62, %v481_v0  ;;  %v586_v7 = vpack.c.bf16 %v516_v4, %v514_v29  ;;  %v578_v9 = vpack.c.bf16 %v497_v41, %v495_v20  ;;  %v733_v2 = vsel %vm716_vm7, %v724_v60, %v2086_v56  ;;  %v1857_v4 = vld [vmem:[#allocation7 + $0x130] sm:$0xff]  }
 0x187   :  { %v484_v12 = vrot.slane %v2089_v61, 1  ;;  %v517_v13 = vrot.slane %v2089_v61, 3  ;;  %v590_v57 = vpack.c.bf16 %v2089_v61, %v2081_v42  ;;  %v500_v17 = vsel %vm492_vm5, %v2054_v1, %v499_v8 }
 0x188   :  { %v743_v63 = vshrl.u32 %v584_v6, 16  ;;  %v746_v14 = vshll.u32 %v584_v6, 16  ;;  %v777_v15 = vshrl.u32 %v586_v7, 16  ;;  %v780_v16 = vshll.u32 %v586_v7, 16  ;;  %v1859_v7 = vld [vmem:[#allocation7 + $0x168] sm:$0xff]  }
 0x189   :  { %v752_v18 = vshrl.u32 %v578_v9, 16  ;;  %v755_v19 = vshll.u32 %v578_v9, 16  ;;  %v485_v20 = vsel %vm475_vm4, %v482_v54, %v484_v12  ;;  %v585_v25 = vpack.c.bf16 %v500_v17, %v498_v5 }
 0x18a   :  { %v745_v21 = vrot.slane %v743_v63, 2  ;;  %v748_v22 = vrot.slane %v746_v14, 3  ;;  %v779_v23 = vrot.slane %v777_v15, 2  ;;  %v782_v24 = vrot.slane %v780_v16, 3  ;;  %v1858_v63 = vld [vmem:[#allocation7 + $0x1b0] sm:$0xff]  }
 0x18b   :  { %v754_v27 = vrot.slane %v752_v18, 2  ;;  %v591_v0 = vpack.c.bf16 %v484_v12, %v485_v20  ;;  %v501_v28 = vrot.slane %v2089_v61, 2  ;;  %v518_v31 = vsel %vm509_vm6, %v515_v55, %v517_v13  ;;  %v1855_v55 = vld [vmem:[#allocation7 + $0x1b8] sm:$0xff]   ;;  %v2133_v18 = vld [vmem:[#allocation2] sm:$0xff] }
 0x18c   :  { %v749_v29 = vor.u32 %v748_v22, %v745_v21  ;;  %v783_v30 = vor.u32 %v782_v24, %v779_v23  ;;  %v837_v32 = vshrl.u32 %v590_v57, 16  ;;  %v757_v33 = vrot.slane %v755_v19, 3  ;;  %v1860_v19 = vld [vmem:[#allocation7 + $0x128] sm:$0xff]  }
 0x18d   :  { %v760_v1 = vshrl.u32 %v585_v25, 16  ;;  %v763_v34 = vshll.u32 %v585_v25, 16  ;;  %v846_v36 = vshrl.u32 %v591_v0, 16  ;;  %v849_v39 = vshll.u32 %v591_v0, 16  ;;  %v1862_v25 = vld [vmem:[#allocation7 + $0x160] sm:$0xff]  }
 0x18e   :  { %v750_v37 = vsel %vm716_vm7, %v741_v58, %v749_v29  ;;  %v784_v38 = vsel %vm716_vm7, %v775_v59, %v783_v30  ;;  %v593_v40 = vpack.c.bf16 %v517_v13, %v518_v31  ;;  %v839_v47 = vrot.slane %v837_v32, 2 }
 0x18f   :  { %1288 = vmatprep.mubr.bf16.mxu0 %v750_v37  ;;  %1343 = vmatprep.mubr.bf16.mxu1 %v784_v38  ;;  %v762_v44 = vrot.slane %v760_v1, 2  ;;  %v765_v45 = vrot.slane %v763_v34, 3  ;;  %v848_v46 = vrot.slane %v846_v36, 2  ;;  %v851_v48 = vrot.slane %v849_v39, 3  ;;  %v1865_v37 = vld [vmem:[#allocation7 + $0x158] sm:$0xff]  }
 0x190   :  { %1289 = vmatmul.mubr.bf16.vlgmr.msra.gmra.mxu0 %v733_v2  ;;  %v864_v49 = vshrl.u32 %v593_v40, 16  ;;  %v867_v50 = vshll.u32 %v593_v40, 16  ;;  %v840_v51 = vshll.u32 %v590_v57, 16  ;;  %v758_v52 = vor.u32 %v757_v33, %v754_v27 }
 0x191   :  { %v766_v54 = vor.u32 %v765_v45, %v762_v44  ;;  %1686 = vmatpush3.bf16.msra.mxu0 %v1854_v35  ;;  %v502_v58 = vsel %vm492_vm5, %v499_v8, %v501_v28  ;;  %v545_v59 = vsel %vm542_vm8, %v543_v10, %v544_v26  ;;  %v852_v60 = vor.u32 %v851_v48, %v848_v46  ;;  %v1866_v46 = vld [vmem:[#allocation7 + $0x118] sm:$0xff]  }
 0x192   :  { %v866_v41 = vrot.slane %v864_v49, 2  ;;  %v869_v62 = vrot.slane %v867_v50, 3  ;;  %1687 = vmatprep.subr.bf16.mxu0 %v1856_v43  ;;  %v842_v5 = vrot.slane %v840_v51, 3  ;;  %v592_v9 = vpack.c.bf16 %v501_v28, %v502_v58  ;;  %v1864_v43 = vld [vmem:[#allocation7 + $0x1a0] sm:$0xff]   ;;  %v1868_v50 = vld [vmem:[#allocation7 + $0x150] sm:$0xff]  }
 0x193   :  { %v767_v6 = vsel %vm716_vm7, %v758_v52, %v766_v54  ;;  %v548_v2 = vrot.slane %v2081_v42, 5  ;;  %v581_v8 = vpack.c.bf16 %v545_v59, %v543_v10  ;;  %v853_v12 = vsel %vm716_vm7, %v749_v29, %v852_v60  ;;  %v1861_v29 = vld [vmem:[#allocation7 + $0x1a8] sm:$0xff]   ;;  %v1867_v59 = vld [vmem:[#allocation7 + $0x198] sm:$0xff]  }
 0x194   :  { %1344 = vmatmul.mubr.bf16.vlgmr.msra.gmra.mxu1 %v767_v6  ;;  %v870_v13 = vor.u32 %v869_v62, %v866_v41  ;;  %v2122_v57 = vor.u32 %v842_v5, %v839_v47  ;;  %1296 = vmatprep.mubr.bf16.mxu0 %v853_v12  ;;  %v855_v14 = vshrl.u32 %v592_v9, 16  ;;  %v858_v15 = vshll.u32 %v592_v9, 16  ;;  %v1869_v62 = vld [vmem:[#allocation7 + $0x110] sm:$0xff]  }
 0x195   :  { %1759 = vmatpush3.bf16.msra.mxu1 %v1855_v55  ;;  %v547_v16 = vsel %vm542_vm8, %v544_v26, %v2064_v11  ;;  %v549_v10 = vsel %vm542_vm8, %v2064_v11, %v548_v2  ;;  %1688 = vmatpush3.bf16.msra.mxu0 %v1857_v4  ;;  %v803_v21 = vshrl.u32 %v581_v8, 16  ;;  %v806_v22 = vshll.u32 %v581_v8, 16 }
 0x196   :  { %v871_v17 = vsel %vm716_vm7, %v783_v30, %v870_v13  ;;  %1760 = vmatprep.subr.bf16.mxu1 %v2133_v18  ;;  %v588_v20 = vpack.c.bf16 %v549_v10, %v547_v16  ;;  %1689 = vmatprep.subr.bf16.mxu0 %v1859_v7  ;;  %v844_v26 = vsel %vm716_vm7, %v2086_v56, %v2122_v57  ;;  %v857_v23 = vrot.slane %v855_v14, 2  ;;  %v1863_v56 = vld [vmem:[#allocation7 + $0x120] sm:$0xff]   ;;  %v1871_v7 = vld [vmem:[#allocation7 + $0x148] sm:$0xff]  }
 0x197   :  { %1351 = vmatprep.mubr.bf16.mxu1 %v871_v17  ;;  %v860_v24 = vrot.slane %v858_v15, 3  ;;  %v527_v30 = vrot.slane %v2057_v3, 4  ;;  %v2141_v31 = vrot.slane %v2133_v18, 4  ;;  %v531_v32 = vrot.slane %v2081_v42, 4  ;;  %v1872_v10 = vld [vmem:[#allocation7 + $0x108] sm:$0xff]  }
 0x198   :  { %1297 = vmatmul.mubr.bf16.gmra.mxu0 %v844_v26  ;;  %v811_v27 = vshrl.u32 %v588_v20, 16  ;;  %v814_v0 = vshll.u32 %v588_v20, 16  ;;  %v805_v33 = vrot.slane %v803_v21, 2  ;;  %v808_v1 = vrot.slane %v806_v22, 3 }
 0x199   :  { %1761 = vmatpush3.bf16.msra.mxu1 %v1858_v63  ;;  %v861_v28 = vor.u32 %v860_v24, %v857_v23  ;;  %1303 = vmatprep.mubr.bf16.mxu0 %v852_v60  ;;  %v532_v39 = vsel %vm525_vm9, %v2141_v31, %v531_v32  ;;  %v565_v40 = vrot.slane %v2081_v42, 6  ;;  %v526_v44 = vrot.slane %v2041_v53, 4 }
 0x19a   :  { %1762 = vmatprep.subr.bf16.mxu1 %v2133_v18  ;;  %1690 = vmatpush3.bf16.msra.mxu0 %v1860_v19  ;;  %v813_v34 = vrot.slane %v811_v27, 2  ;;  %v816_v35 = vrot.slane %v814_v0, 3  ;;  %v561_v45 = vrot.slane %v2057_v3, 6  ;;  %v809_v47 = vor.u32 %v808_v1, %v805_v33  ;;  %v1874_v19 = vld [vmem:[#allocation7 + $0x140] sm:$0xff]   ;;  %v1873_v27 = vld [vmem:[#allocation7 + $0x188] sm:$0xff]  }
 0x19b   :  { %v862_v36 = vsel %vm716_vm7, %v766_v54, %v861_v28  ;;  %1691 = vmatprep.subr.bf16.mxu0 %v1862_v25  ;;  %v530_v48 = vsel %vm525_vm9, %v527_v30, %v2141_v31  ;;  %v563_v49 = vrot.slane %v2133_v18, 6  ;;  %v528_v51 = vsel %vm525_vm9, %v526_v44, %v527_v30 }
 0x19c   :  { %1352 = vmatmul.mubr.bf16.gmra.mxu1 %v862_v36  ;;  %v2146_v38 = vor.u32 %v816_v35, %v813_v34  ;;  %v587_v52 = vpack.c.bf16 %v532_v39, %v530_v48  ;;  %v560_v54 = vrot.slane %v2041_v53, 6  ;;  %v550_v3 = vrot.slane %v2089_v61, 5 }
 0x19d   :  { %1763 = vmatpush3.bf16.msra.mxu1 %v1861_v29  ;;  %1358 = vmatprep.mubr.bf16.mxu1 %v870_v13  ;;  %v566_v58 = vsel %vm559_vm10, %v563_v49, %v565_v40  ;;  %v580_v4 = vpack.c.bf16 %v528_v51, %v526_v44  ;;  %v564_v5 = vsel %vm559_vm10, %v561_v45, %v563_v49  ;;  %v533_v12 = vrot.slane %v2089_v61, 4 }
 0x19e   :  { %1764 = vmatprep.subr.bf16.mxu1 %v2133_v18  ;;  %1692 = vmatpush3.bf16.msra.mxu0 %v1863_v56  ;;  %v818_v55 = vsel %vm716_vm7, %v809_v47, %v2146_v38  ;;  %v562_v60 = vsel %vm559_vm10, %v560_v54, %v561_v45  ;;  %v551_v53 = vsel %vm542_vm8, %v548_v2, %v550_v3  ;;  %v794_v9 = vshrl.u32 %v587_v52, 16 }
 0x19f   :  { %1693 = vmatprep.subr.bf16.mxu0 %v1865_v37  ;;  %v552_v41 = vsel %vm542_vm8, %v550_v3, %v2064_v11  ;;  %v589_v8 = vpack.c.bf16 %v566_v58, %v564_v5  ;;  %v797_v13 = vshll.u32 %v587_v52, 16  ;;  %v582_v2 = vpack.c.bf16 %v562_v60, %v560_v54  ;;  %v1870_v11 = vld [vmem:[#allocation7 + $0x190] sm:$0xff]   ;;  %v1876_v37 = vld [vmem:[#allocation7 + $0x180] sm:$0xff]  }
 0x1a0   :  { %1304 = vmatmul.mubr.bf16.gmra.mxu0 %v2122_v57  ;;  %v595_v6 = vpack.c.bf16 %v552_v41, %v551_v53  ;;  %v567_v57 = vrot.slane %v2089_v61, 6  ;;  %v534_v15 = vsel %vm525_vm9, %v531_v32, %v533_v12  ;;  %v535_v16 = vsel %vm525_vm9, %v533_v12, %v2141_v31  ;;  %v1875_v31 = vld [vmem:[#allocation7 + $0x100] sm:$0xff]  }
 0x1a1   :  { %1765 = vmatpush3.bf16.msra.mxu1 %v1864_v43  ;;  %1398 = vmatprep.mubr.bf16.mxu0 %v818_v55  ;;  %v786_v17 = vshrl.u32 %v580_v4, 16  ;;  %v789_v61 = vshll.u32 %v580_v4, 16  ;;  %v796_v20 = vrot.slane %v794_v9, 2  ;;  %v828_v21 = vshrl.u32 %v589_v8, 16 }
 0x1a2   :  { %1766 = vmatprep.subr.bf16.mxu1 %v2133_v18  ;;  %1694 = vmatpush3.bf16.msra.mxu0 %v1866_v46  ;;  %v882_v63 = vshrl.u32 %v595_v6, 16  ;;  %v885_v14 = vshll.u32 %v595_v6, 16  ;;  %v831_v22 = vshll.u32 %v589_v8, 16  ;;  %v799_v26 = vrot.slane %v797_v13, 3 }
 0x1a3   :  { %1695 = vmatprep.subr.bf16.mxu0 %v1868_v50  ;;  %v594_v23 = vpack.c.bf16 %v535_v16, %v534_v15  ;;  %v568_v24 = vsel %vm559_vm10, %v565_v40, %v567_v57  ;;  %v569_v25 = vsel %vm559_vm10, %v567_v57, %v563_v49  ;;  %v820_v0 = vshrl.u32 %v582_v2, 16 }
 0x1a4   :  { %1359 = vmatmul.mubr.bf16.gmra.mxu1 %v861_v28  ;;  %v823_v28 = vshll.u32 %v582_v2, 16  ;;  %v884_v29 = vrot.slane %v882_v63, 2  ;;  %v887_v30 = vrot.slane %v885_v14, 3  ;;  %v788_v32 = vrot.slane %v786_v17, 2 }
 0x1a5   :  { %1767 = vmatpush3.bf16.msra.mxu1 %v1867_v59  ;;  %1774 = vmatprep.mubr.msk.bf16.mxu1 %vm1952_vm0, %v2133_v18  ;;  %v791_v56 = vrot.slane %v789_v61, 3  ;;  %v830_v33 = vrot.slane %v828_v21, 2  ;;  %v833_v1 = vrot.slane %v831_v22, 3  ;;  %v596_v42 = vpack.c.bf16 %v569_v25, %v568_v24  ;;  %v1515_v22 = vld [vmem:[%s2221_s4] ss:$0 sm:$0xff] }
 0x1a6   :  { %1768 = vmatprep.subr.bf16.mxu1 %v2133_v18  ;;  %1696 = vmatpush3.bf16.msra.mxu0 %v1869_v62  ;;  %v800_v34 = vor.u32 %v799_v26, %v796_v20  ;;  %v873_v35 = vshrl.u32 %v594_v23, 16  ;;  %v876_v36 = vshll.u32 %v594_v23, 16  ;;  %v822_v39 = vrot.slane %v820_v0, 2 }
 0x1a7   :  { %1697 = vmatprep.subr.bf16.mxu0 %v1871_v7  ;;  %v825_v40 = vrot.slane %v823_v28, 3  ;;  %v888_v43 = vor.u32 %v887_v30, %v884_v29  ;;  %v792_v44 = vor.u32 %v791_v56, %v788_v32  ;;  %v834_v45 = vor.u32 %v833_v1, %v830_v33 }
 0x1a8   :  { %v891_v46 = vshrl.u32 %v596_v42, 16  ;;  %v894_v47 = vshll.u32 %v596_v42, 16  ;;  %v875_v49 = vrot.slane %v873_v35, 2  ;;  %v878_v50 = vrot.slane %v876_v36, 3 }
 0x1a9   :  { %1769 = vmatpush3.bf16.msra.mxu1 %v1870_v11  ;;  %v801_v48 = vsel %vm716_vm7, %v792_v44, %v800_v34  ;;  %v826_v51 = vor.u32 %v825_v40, %v822_v39  ;;  %v889_v52 = vsel %vm716_vm7, %v2146_v38, %v888_v43 }
 0x1aa   :  { %1770 = vmatprep.subr.bf16.mxu1 %v2133_v18  ;;  %1698 = vmatpush3.bf16.msra.mxu0 %v1872_v10  ;;  %v893_v3 = vrot.slane %v891_v46, 2  ;;  %v896_v55 = vrot.slane %v894_v47, 3  ;;  %v879_v58 = vor.u32 %v878_v50, %v875_v49 }
 0x1ab   :  { %1699 = vmatprep.subr.bf16.mxu0 %v1874_v19  ;;  %v835_v54 = vsel %vm716_vm7, %v826_v51, %v834_v45 }
 0x1ac   :  { %v897_v59 = vor.u32 %v896_v55, %v893_v3  ;;  %v880_v60 = vsel %vm716_vm7, %v800_v34, %v879_v58 }
 0x1ad   :  { %1771 = vmatpush3.bf16.msra.mxu1 %v1873_v27 }
 0x1ae   :  { %1772 = vmatprep.subr.bf16.mxu1 %v2133_v18  ;;  %1700 = vmatpush3.bf16.msra.mxu0 %v1875_v31  ;;  %v898_v53 = vsel %vm716_vm7, %v834_v45, %v897_v59 }
 0x1b1   :  { %1773 = vmatpush3.bf16.msra.mxu1 %v1876_v37  ;;  %1399 = vmatmul.mubr.bf16.vlgmr.msra.gmra.mxu0 %v801_v48 }
 0x1b2   :  { %1406 = vmatprep.mubr.bf16.mxu0 %v889_v52 }
 0x1b4   :  { %1775 = vmatmul.mubr.bf16.vlgmr.msra.gmra.mxu1 %v835_v54 }
 0x1b5   :  { %1778 = vmatprep.mubr.msk.bf16.mxu1 %vm1952_vm0, %v2133_v18 }
 0x1b9   :  { %1407 = vmatmul.mubr.bf16.gmra.mxu0 %v880_v60 }
 0x1ba   :  { %1413 = vmatprep.mubr.bf16.mxu0 %v888_v43 }
 0x1bc   :  { %1779 = vmatmul.mubr.bf16.gmra.mxu1 %v898_v53 }
 0x1bd   :  { %1782 = vmatprep.mubr.msk.bf16.mxu1 %vm1952_vm0, %v2133_v18 }
 0x1c1   :  { %1414 = vmatmul.mubr.bf16.gmra.mxu0 %v879_v58 }
 0x1c4   :  { %1783 = vmatmul.mubr.bf16.gmra.mxu1 %v897_v59 }
 0x250   :  { %v1633_v38 = vpop.f32.mrf.mxu0 }
 0x252   :  { %v1634_v41 = vpop.f32.mrf.mxu0 }
 0x253   :  { %v1635_v21 = vadd.f32 %v1634_v41, %v1633_v38 }
 0x254   :  { %v1667_v62 = vpop.f32.mrf.mxu1  ;;  %v1636_v4 = vpop.f32.mrf.mxu0 }
 0x255   :  { %v1291_v26 = vadd.f32 %v1635_v21, %v1515_v22 }
 0x256   :  { %v1668_v5 = vpop.f32.mrf.mxu1  ;;  %v1637_v6 = vpop.f32.mrf.mxu0 }
 0x257   :  { %v1638_v23 = vadd.f32 %v1637_v6, %v1636_v4  ;;  %v1669_v25 = vadd.f32 %v1668_v5, %v1667_v62 }
 0x258   :  { %v1670_v7 = vpop.f32.mrf.mxu1  ;;  %v1639_v9 = vpop.f32.mrf.mxu0 }
 0x259   :  { %v1346_v0 = vadd.f32 %v1669_v25, %v1291_v26  ;;  %v1294_v28 = vadd.f32 %v1638_v23, %v1515_v22 }
 0x25a   :  { %v1671_v8 = vpop.f32.mrf.mxu1  ;;  %v1640_v12 = vpop.f32.mrf.mxu0 }
 0x25b   :  { %v1672_v32 = vadd.f32 %v1671_v8, %v1670_v7 }
 0x25c   :  { %v1673_v13 = vpop.f32.mrf.mxu1  ;;  %v1642_v2 = vpop.f32.mrf.mxu0 }
 0x25d   :  { %v1349_v42 = vadd.f32 %v1672_v32, %v1294_v28 }
 0x25e   :  { %v1674_v57 = vpop.f32.mrf.mxu1  ;;  %v1643_v11 = vpop.f32.mrf.mxu0 }
 0x25f   :  { %v1644_v34 = vadd.f32 %v1643_v11, %v1642_v2 }
 0x260   :  { %v1676_v63 = vpop.f32.mrf.mxu1  ;;  %v1645_v14 = vpop.f32.mrf.mxu0 }
 0x261   :  { %v1301_v46 = vadd.f32 %v1644_v34, %v1515_v22 }
 0x262   :  { %v1677_v15 = vpop.f32.mrf.mxu1  ;;  %v1646_v18 = vpop.f32.mrf.mxu0 }
 0x263   :  { %v1647_v47 = vadd.f32 %v1646_v18, %v1645_v14  ;;  %v1678_v51 = vadd.f32 %v1677_v15, %v1676_v63 }
 0x264   :  { %v1679_v16 = vpop.f32.mrf.mxu1  ;;  %v1648_v10 = vpop.f32.mrf.mxu0 }
 0x265   :  { %v1356_v55 = vadd.f32 %v1678_v51, %v1301_v46  ;;  %v1306_v58 = vadd.f32 %v1647_v47, %v1515_v22 }
 0x266   :  { %v1680_v17 = vpop.f32.mrf.mxu1  ;;  %v1649_v61 = vpop.f32.mrf.mxu0 }
 0x267   :  { %v1681_v38 = vadd.f32 %v1680_v17, %v1679_v16 }
 0x268   :  { %v1682_v19 = vpop.f32.mrf.mxu1 }
 0x269   :  { %v1361_v5 = vadd.f32 %v1681_v38, %v1306_v58 }
 0x26a   :  { %v1683_v20 = vpop.f32.mrf.mxu1 }
 0x271   :  { %v1701_v24 = vpop.f32.mrf.mxu0 }
 0x273   :  { %v1702_v27 = vpop.f32.mrf.mxu0 }
 0x274   :  { %v1455_v29 = vpop.f32.mrf.mxu1  ;;  %v1703_v30 = vadd.f32 %v1702_v27, %v1701_v24 }
 0x275   :  { %v1704_v31 = vpop.f32.mrf.mxu0 }
 0x276   :  { %v1401_v56 = vadd.f32 %v1703_v30, %v1346_v0  ;;  %v1776_v33 = vpop.f32.mrf.mxu1 }
 0x277   :  { %v1705_v1 = vpop.f32.mrf.mxu0 }
 0x278   :  { %v1456_v35 = vadd.f32 %v1455_v29, %v1401_v56  ;;  %v1458_v36 = vpop.f32.mrf.mxu1  ;;  %v1706_v37 = vadd.f32 %v1705_v1, %v1704_v31 }
 0x279   :  { %v1707_v39 = vpop.f32.mrf.mxu0 }
 0x27a   :  { %v1476_v40 = vmax.f32 %v1456_v35, 0.0  ;;  %v1404_v43 = vadd.f32 %v1706_v37, %v1349_v42  ;;  %v1777_v44 = vpop.f32.mrf.mxu1 }
 0x27b   :  { %v1708_v45 = vpop.f32.mrf.mxu0 }
 0x27c   :  { %1480 = vst [vmem:[%s2222_s5] sm:$0xff] %v1476_v40  ;;  %v1459_v48 = vadd.f32 %v1458_v36, %v1404_v43  ;;  %v1463_v49 = vpop.f32.mrf.mxu1 }
 0x27d   :  { %v1710_v50 = vpop.f32.mrf.mxu0 }
 0x27e   :  { %v1477_v52 = vmax.f32 %v1459_v48, 0.0  ;;  %v1780_v54 = vpop.f32.mrf.mxu1 }
 0x27f   :  { %v1711_v3 = vpop.f32.mrf.mxu0 }
 0x280   :  { %1481 = vst [vmem:[%s2222_s5 + $0x8] sm:$0xff] %v1477_v52  ;;  %v1465_v59 = vpop.f32.mrf.mxu1  ;;  %v1712_v60 = vadd.f32 %v1711_v3, %v1710_v50 }
 0x281   :  { %v1713_v53 = vpop.f32.mrf.mxu0 }
 0x282   :  { %v1411_v41 = vadd.f32 %v1712_v60, %v1356_v55  ;;  %v1781_v62 = vpop.f32.mrf.mxu1 }
 0x283   :  { %v1714_v4 = vpop.f32.mrf.mxu0 }
 0x284   :  { %v1466_v6 = vadd.f32 %v1465_v59, %v1411_v41  ;;  %v1470_v7 = vpop.f32.mrf.mxu1  ;;  %v1715_v9 = vadd.f32 %v1714_v4, %v1713_v53 }
 0x285   :  { %v1716_v8 = vpop.f32.mrf.mxu0 }
 0x286   :  { %v1478_v12 = vmax.f32 %v1466_v6, 0.0  ;;  %v1416_v13 = vadd.f32 %v1715_v9, %v1361_v5  ;;  %v1784_v2 = vpop.f32.mrf.mxu1 }
 0x287   :  { %v1717_v57 = vpop.f32.mrf.mxu0 }
 0x288   :  { %1482 = vst [vmem:[%s2222_s5 + $0x10] sm:$0xff] %v1478_v12  ;;  %v1471_v11 = vadd.f32 %v1470_v7, %v1416_v13  ;;  %v1473_v63 = vpop.f32.mrf.mxu1 }
 0x28a   :  { %v1479_v14 = vmax.f32 %v1471_v11, 0.0  ;;  %v1785_v15 = vpop.f32.mrf.mxu1 }
 0x28c   :  { %1483 = vst [vmem:[%s2222_s5 + $0x18] sm:$0xff] %v1479_v14 }
 0x28d   :  { %1488 = vsyncpa [#allocation4], 1 }
 0x28e   :  { %1489 = vsyncpa [#allocation6], 1 }

</bundles_post_ra>
